<compile_context>
chip_gen: v7x
topology: tpu7x:2x2x1
jax: 0.10.0
libtpu: 0.0.40
codegen_flags: <defaults>
</compile_context>

<pallas_src>
import jax
import jax.numpy as jnp
from jax import lax
from jax.experimental import pallas as pl
from jax.experimental.pallas import tpu as pltpu


def _round_up(v, m):
    return ((v + m - 1) // m) * m


def mlp_head_kernel(x_ref, w1_ref, b1_ref, w2_ref, b2_ref, o_ref):
    # x_ref: (tile_m, dim_in) tile of node features (rows = nodes, features on the lane axis).
    x = x_ref[...]
    # hidden layer: Linear + bias + ReLU (f32 accumulate on the MXU)
    h = jnp.dot(x, w1_ref[...],
                preferred_element_type=jnp.float32,
                precision=lax.Precision.HIGHEST) + b1_ref[...]
    h = jnp.maximum(h, 0.0)
    # final layer: Linear + bias, no activation (has_act=False); true dim_out width, no lane padding
    o = jnp.dot(h, w2_ref[...],
                preferred_element_type=jnp.float32,
                precision=lax.Precision.HIGHEST) + b2_ref[...]
    o_ref[...] = o.astype(o_ref.dtype)


def mlp_post_mp(x, w1, b1, w2, b2, *, tile_m=1024, stream_dtype=None):
    """2-layer post-message-passing MLP on all nodes, computed in a Pallas kernel.

    stream_dtype: optional dtype (e.g. jnp.bfloat16) used for the streamed activation/output
    HBM traffic.  Weights stay in their original dtype (they are VMEM-resident).
    """
    if stream_dtype is not None and x.dtype != stream_dtype:
        x = x.astype(stream_dtype)
    out_dtype = x.dtype

    N, dim_in = x.shape
    dim_out = w2.shape[1]

    # Row granularity: 16 rows for 16-bit streaming (sublane packing), 8 for 32-bit.
    row_g = 16 if jnp.dtype(out_dtype).itemsize == 2 else 8

    # Keep the grid >= ~4 steps where possible (feeds both TensorCores on v7x), but never
    # below one sublane group; big graphs still get large, pipeline-friendly tiles.
    tile_m = min(tile_m, _round_up(pl.cdiv(N, 4), row_g))
    tile_m = max(tile_m, row_g)

    grid = (pl.cdiv(N, tile_m),)  # ragged last block handled by Pallas; no jnp.pad of x

    # Advisory cost estimate: this kernel is HBM-bandwidth bound (x in + out out dominate).
    bytes_accessed = int(
        x.size * x.dtype.itemsize
        + N * dim_out * jnp.dtype(out_dtype).itemsize
        + w1.size * w1.dtype.itemsize + b1.size * b1.dtype.itemsize
        + w2.size * w2.dtype.itemsize + b2.size * b2.dtype.itemsize)
    flops = int(2 * N * dim_in * (dim_in + dim_out))
    cost = pl.CostEstimate(flops=flops, transcendentals=0, bytes_accessed=bytes_accessed)

    out = pl.pallas_call(
        mlp_head_kernel,
        out_shape=jax.ShapeDtypeStruct((N, dim_out), out_dtype),
        grid_spec=pltpu.PrefetchScalarGridSpec(
            num_scalar_prefetch=0,
            grid=grid,
            in_specs=[
                pl.BlockSpec((tile_m, dim_in), lambda i: (i, 0)),   # x tile (streams over the grid)
                pl.BlockSpec((dim_in, dim_in), lambda i: (0, 0)),   # W1 (resident)
                pl.BlockSpec((1, dim_in),      lambda i: (0, 0)),   # b1 (resident)
                pl.BlockSpec((dim_in, dim_out), lambda i: (0, 0)),  # W2 (resident, true width)
                pl.BlockSpec((1, dim_out),      lambda i: (0, 0)),  # b2 (resident, true width)
            ],
            out_specs=pl.BlockSpec((tile_m, dim_out), lambda i: (i, 0)),  # unpadded output block
        ),
        compiler_params=pltpu.CompilerParams(
            dimension_semantics=("parallel",)),                     # shards grid across TCs on v7x
        cost_estimate=cost,
    )(x, w1, b1, w2, b2)
    return out


def gnn_inductive_masked_node_head(x, y, real_mask, params, *, stream_dtype=None):
    """Full forward: MLP (Pallas) + masked index selection (eager glue, dynamic shape)."""
    w1, b1, w2, b2 = params
    pred_all = mlp_post_mp(x, w1, b1, w2, b2, stream_dtype=stream_dtype)
    # _apply_index: boolean mask gather. Output shape is data-dependent, so this is eager-only glue.
    # TODO(synk): under jax.jit, switch to jnp.nonzero(real_mask, size=N) + a valid-count and keep
    # padded static shapes; an in-kernel scalar-prefetch gather would need 1-row blocks (perf loss),
    # so the gather stays outside the kernel.
    idx = jnp.nonzero(real_mask)[0]
    return pred_all[idx], y[idx]


if __name__ == "__main__":
    # Small shapes consistent with the module: N nodes, dim_in -> dim_out, 2 post-MP layers.
    N, dim_in, dim_out = 16, 32, 8
    key = jax.random.PRNGKey(0)
    k_x, k_w1, k_b1, k_w2, k_b2, k_y, k_m = jax.random.split(key, 7)

    x = jax.random.normal(k_x, (N, dim_in), dtype=jnp.float32)
    y = jax.random.randint(k_y, (N,), 0, dim_out, dtype=jnp.int32)
    real_mask = jax.random.bernoulli(k_m, 0.5, (N,))

    # Deterministic parameter init (synthetic; no checkpoint load).
    w1 = jax.random.normal(k_w1, (dim_in, dim_in), dtype=jnp.float32) * (1.0 / jnp.sqrt(dim_in))
    b1 = jax.random.normal(k_b1, (1, dim_in), dtype=jnp.float32) * 0.01
    w2 = jax.random.normal(k_w2, (dim_in, dim_out), dtype=jnp.float32) * (1.0 / jnp.sqrt(dim_in))
    b2 = jax.random.normal(k_b2, (1, dim_out), dtype=jnp.float32) * 0.01
    params = (w1, b1, w2, b2)

    # --- f32 path (matches the PyTorch module's dtype exactly) ---
    pred, label = gnn_inductive_masked_node_head(x, y, real_mask, params)
    jax.block_until_ready((pred, label))

    # Reference check (pure JAX, precision-matched) for the MLP + mask semantics.
    hp = lax.Precision.HIGHEST
    h_ref = jnp.maximum(jnp.dot(x, w1, precision=hp) + b1, 0.0)
    ref_all = jnp.dot(h_ref, w2, precision=hp) + b2
    ref_idx = jnp.nonzero(real_mask)[0]
    ref_pred = ref_all[ref_idx]
    assert pred.shape == ref_pred.shape
    assert jnp.allclose(pred, ref_pred, atol=1e-5, rtol=1e-5)
    assert label.shape[0] == pred.shape[0]
    assert jnp.array_equal(label, y[ref_idx])

    # --- bf16-streamed path (halves the dominant HBM streams; f32 accumulation in-kernel) ---
    pred_bf16, label_bf16 = gnn_inductive_masked_node_head(
        x, y, real_mask, params, stream_dtype=jnp.bfloat16)
    jax.block_until_ready((pred_bf16, label_bf16))
    assert pred_bf16.dtype == jnp.bfloat16
    assert jnp.allclose(pred_bf16.astype(jnp.float32), ref_pred, atol=3e-2, rtol=3e-2)
    assert jnp.array_equal(label_bf16, y[ref_idx])

    print("KERNEL_OK")
</pallas_src>

<mosaic_0001>
module attributes {stable_mosaic.version = 11 : i64} {
  func.func @mlp_head_kernel(%arg0: i32, %arg1: memref<8x32xf32, #tpu.memory_space<vmem>>, %arg2: memref<32x32xf32, #tpu.memory_space<vmem>>, %arg3: memref<1x32xf32, #tpu.memory_space<vmem>>, %arg4: memref<32x8xf32, #tpu.memory_space<vmem>>, %arg5: memref<1x8xf32, #tpu.memory_space<vmem>>, %arg6: memref<8x8xf32, #tpu.memory_space<vmem>>) attributes {dimension_semantics = [#tpu.dimension_semantics<parallel>], iteration_bounds = array<i64: 2>, scalar_prefetch = 0 : i64, scratch_operands = 0 : i64, tpu.core_type = #tpu.core_type<tc>, window_params = [{transform_indices = @transform_0, window_bounds = array<i64: 8, 32>}, {pipeline_mode = #tpu.pipeline_mode<synchronous>, transform_indices = @transform_1, window_bounds = array<i64: 32, 32>}, {pipeline_mode = #tpu.pipeline_mode<synchronous>, transform_indices = @transform_2, window_bounds = array<i64: 1, 32>}, {pipeline_mode = #tpu.pipeline_mode<synchronous>, transform_indices = @transform_3, window_bounds = array<i64: 32, 8>}, {pipeline_mode = #tpu.pipeline_mode<synchronous>, transform_indices = @transform_4, window_bounds = array<i64: 1, 8>}, {transform_indices = @transform_5, window_bounds = array<i64: 8, 8>}]} {
    %c0 = arith.constant 0 : index
    %c0_0 = arith.constant 0 : index
    %0 = vector.load %arg1[%c0, %c0_0] : memref<8x32xf32, #tpu.memory_space<vmem>>, vector<8x32xf32>
    %c0_1 = arith.constant 0 : index
    %c0_2 = arith.constant 0 : index
    %1 = vector.load %arg2[%c0_1, %c0_2] : memref<32x32xf32, #tpu.memory_space<vmem>>, vector<32x32xf32>
    %cst = arith.constant dense<0.000000e+00> : vector<8x32xf32>
    %2 = tpu.matmul %0, %1, %cst {dimension_numbers = #tpu.dot_dimension_numbers<[1], [0], [0], [1], [0, 0, 1, 1], [], []>, precision = #tpu.contract_precision<fp32>} : vector<8x32xf32>, vector<32x32xf32>, vector<8x32xf32> -> vector<8x32xf32>
    %c0_3 = arith.constant 0 : index
    %c0_4 = arith.constant 0 : index
    %3 = vector.load %arg3[%c0_3, %c0_4] : memref<1x32xf32, #tpu.memory_space<vmem>>, vector<1x32xf32>
    %4 = vector.broadcast %3 : vector<1x32xf32> to vector<8x32xf32>
    %5 = arith.addf %2, %4 : vector<8x32xf32>
    %cst_5 = arith.constant 0.000000e+00 : f32
    %6 = vector.broadcast %cst_5 : f32 to vector<8x32xf32>
    %7 = arith.maximumf %5, %6 : vector<8x32xf32>
    %c0_6 = arith.constant 0 : index
    %c0_7 = arith.constant 0 : index
    %8 = vector.load %arg4[%c0_6, %c0_7] : memref<32x8xf32, #tpu.memory_space<vmem>>, vector<32x8xf32>
    %cst_8 = arith.constant dense<0.000000e+00> : vector<8x8xf32>
    %9 = tpu.matmul %7, %8, %cst_8 {dimension_numbers = #tpu.dot_dimension_numbers<[1], [0], [0], [1], [0, 0, 1, 1], [], []>, precision = #tpu.contract_precision<fp32>} : vector<8x32xf32>, vector<32x8xf32>, vector<8x8xf32> -> vector<8x8xf32>
    %c0_9 = arith.constant 0 : index
    %c0_10 = arith.constant 0 : index
    %10 = vector.load %arg5[%c0_9, %c0_10] : memref<1x8xf32, #tpu.memory_space<vmem>>, vector<1x8xf32>
    %11 = vector.broadcast %10 : vector<1x8xf32> to vector<8x8xf32>
    %12 = arith.addf %9, %11 : vector<8x8xf32>
    %c0_11 = arith.constant 0 : index
    %c0_12 = arith.constant 0 : index
    %13 = vector.load %arg6[%c0_11, %c0_12] : memref<8x8xf32, #tpu.memory_space<vmem>>, vector<8x8xf32>
    tpu.vector_store %arg6[%c0_11, %c0_12], %12 {strides = array<i32>} : memref<8x8xf32, #tpu.memory_space<vmem>>, vector<8x8xf32>,
    return
  }
  func.func @transform_0(%arg0: i32) -> (i32, i32) {
    %c0_i32 = arith.constant 0 : i32
    %c0_i32_0 = arith.constant 0 : i32
    return %arg0, %c0_i32 : i32, i32
  }
  func.func @transform_1(%arg0: i32) -> (i32, i32) {
    %c0_i32 = arith.constant 0 : i32
    %c0_i32_0 = arith.constant 0 : i32
    %c0_i32_1 = arith.constant 0 : i32
    return %c0_i32, %c0_i32_0 : i32, i32
  }
  func.func @transform_2(%arg0: i32) -> (i32, i32) {
    %c0_i32 = arith.constant 0 : i32
    %c0_i32_0 = arith.constant 0 : i32
    %c0_i32_1 = arith.constant 0 : i32
    return %c0_i32, %c0_i32_0 : i32, i32
  }
  func.func @transform_3(%arg0: i32) -> (i32, i32) {
    %c0_i32 = arith.constant 0 : i32
    %c0_i32_0 = arith.constant 0 : i32
    %c0_i32_1 = arith.constant 0 : i32
    return %c0_i32, %c0_i32_0 : i32, i32
  }
  func.func @transform_4(%arg0: i32) -> (i32, i32) {
    %c0_i32 = arith.constant 0 : i32
    %c0_i32_0 = arith.constant 0 : i32
    %c0_i32_1 = arith.constant 0 : i32
    return %c0_i32, %c0_i32_0 : i32, i32
  }
  func.func @transform_5(%arg0: i32) -> (i32, i32) {
    %c0_i32 = arith.constant 0 : i32
    %c0_i32_0 = arith.constant 0 : i32
    return %arg0, %c0_i32 : i32, i32
  }
}

</mosaic_0001>

<bundles_post_ra>
// kernel: tpu_custom_call.1
= control target key start
LH: loop header
LB: loop body
LE: loop exit
PB: predicated region body
PF: predicated region fallthrough
CT: control target
= control target key end

     0   :  { %10 = vsyncpa [#allocation3], 0  ;;  %s1940_s0 = inlined_call_operand.hbm [shape: f32[16,32], index: 0, kind: input, shape index: {}]   ;;  %s1941_s1 = inlined_call_operand.vmem [shape: f32[32,32], index: 1, kind: input, shape index: {}]   ;;  %s1942_s2 = inlined_call_operand.vmem [shape: f32[1,32], index: 2, kind: input, shape index: {}]   ;;  %s1943_s3 = inlined_call_operand.vmem [shape: f32[32,8], index: 3, kind: input, shape index: {}]   ;;  %s1944_s4 = inlined_call_operand.vmem [shape: f32[1,8], index: 4, kind: input, shape index: {}]   ;;  %s1945_s5 = inlined_call_operand.vmem [shape: f32[16,8], index: 5, kind: output, shape index: {}]  }
   0x1   :  { %12 = vsyncpa [#allocation3 + $0x1], 0  ;;  %s1748_s18 = smov 0   ;;  %s1750_s19 = smov 0  }
   0x2   :  { %s1752_s20 = smov 0   ;;  %s1754_s21 = smov 0  }
   0x3 LB: > { %s1767_s22 = sadd.s32 4294967295, %s1712_s21   ;;  %s1770_s23 = sadd.s32 1, %s1712_s21   ;;  %s1712_s21 = sphi %s1754_s21, %s1953_s21   ;;  %s1708_s20 = sphi %s1752_s20, %s1952_s20   ;;  %s1704_s19 = sphi %s1750_s19, %s1951_s19   ;;  %s1700_s18 = sphi %s1748_s18, %s1950_s18  }
   0x4   : > { %s22_s24 = ssub.s32 %s1712_s21, %s1770_s23  ;;  %s25_s25 = sadd.s32 1, %s1708_s20 }
   0x5   : > { %p23_p0 = scmp.eq.s32.totalorder %s22_s24, 0  ;;  %p32_p1 = scmp.ne.s32.totalorder %s1708_s20, %s1704_s19 }
   0x6   : > { %p33_p2 = scmp.eq.s32.totalorder %s1712_s21, 0  ;;  %p38_p3 = scmp.ne.s32.totalorder %s1704_s19, %s1700_s18 }
   0x7   : > { %s1780_s26 = scalar_select %p23_p0, %s1708_s20, %s25_s25  }
   0x8   : > { %p34_p4 = por %p33_p2, %p32_p1  ;;  %p39_p5 = scmp.eq.s32.totalorder %s1767_s22, 0 }
   0x9   : > { %p1612_p6 = scmp.lt.s32.totalorder %s1712_s21, 2  ;;  %s184_s28 = sand.u32 1, %s1708_s20  }
   0xa   : > { %p1784_p7 = por %p39_p5, %p38_p3  ;;  %s1311_s29 = sshll.u32 %s184_s28, 3 }
   0xb   : > { %s1312_s30 = sshll.u32 %s1712_s21, 7  ;;  %s188_s9 = scalar_lea.vmem [#allocation2], %s1311_s29 }
   0xc   : > { %s1793_s8 = scalar_lea.hbm %s1940_s0, %s1312_s30  ;;  %s195_s10 = sshll.u32 %s188_s9, 4  ;;  %s1795_s10 = int_to_ptr.vmem [resolvable:$true] %s195_s10 }
   0xd   : > { %p1797_p8 = pnand %p1612_p6, %p34_p4  ;;  %s185_s12 = scalar_lea.sflag [#allocation3], %s184_s28 }
   0xe   : > { %s1648_s13 = scalar_lea.hbm %s1793_s8, 128  ;;  %s1653_s16 = scalar_lea.hbm %s1940_s0, 256 }
   0xf   : > { %p1649_p11 = scmp.ne.s32.totalorder %s1793_s8, %s1648_s13  ;;  %p1650_p12 = pneg %p1797_p8 }
  0x10   : > { %p1654_p1 = scmp.lt.u32.totalorder %s1793_s8, %s1940_s0  ;;  %p1655_p2 = scmp.lt.u32.totalorder %s1653_s16, %s1648_s13 }
  0x11   : > { %p1651_p13 = pnand %p1650_p12, %p1649_p11  ;;  %p1657_p4 = scmp.lt.u32.totalorder %s1648_s13, %s1793_s8 }
  0x12   : > { %p1656_p3 = por %p1655_p2, %p1654_p1 }
  0x13   : > { %p1652_p0 = pneg %p1651_p13 }
  0x14   : > { %p1658_p5 = por %p1657_p4, %p1656_p3 }
  0x16   : > { %p1659_p6 = pnand %p1658_p5, %p1652_p0 }
  0x18   : > { %1662 = shalt.err (!%p1659_p6)
}
  0x19   : > { %s1663_s24 = scalar_lea.vmem %s1795_s10, 128  ;;  %s1714_s25 = smov [#allocation2]  }
  0x1a   : > { %p1664_p11 = scmp.ne.s32.totalorder %s1795_s10, %s1663_s24  ;;  %s1668_s28 = sshll.u32 %s1714_s25, 4  ;;  %s1669_s28 = int_to_ptr.vmem [resolvable:$false] %s1668_s28 }
  0x1b   : > { %s1670_s29 = scalar_lea.vmem %s1669_s28, 256  ;;  %p1671_p10 = scmp.lt.s32.totalorder %s1795_s10, %s1669_s28 }
  0x1c   : > { %p1666_p13 = pnand %p1664_p11, %p1650_p12  ;;  %p1672_p1 = scmp.lt.s32.totalorder %s1670_s29, %s1663_s24 }
  0x1e   : > { %p1667_p9 = pneg %p1666_p13  ;;  %p1673_p2 = por %p1672_p1, %p1671_p10 }
  0x20   : > { %p1674_p3 = pnand %p1673_p2, %p1667_p9 }
  0x22   : > { %1677 = shalt.err (!%p1674_p3)
}
  0x23   : > { %1611 = dma.hbm_to_vmem [thread:$0]  (!%p1797_p8), %s1793_s8, 128, %s1795_s10, %s185_s12  }
  0x24   : > { %p1948_p0 = scmp.lt.s32.totalorder %s1712_s21, 3  ;;  %p1949_p4 = scmp.ge.s32.totalorder %s1712_s21, 1 }
  0x26   : > { %p201_p12 = pnand %p1949_p4, %p1948_p0 }
  0x27   : > { %s206_s30 = sand.u32 (!%p201_p12), 1, %s1704_s19  }
  0x28   : > { %204 = sbr.rel (%p201_p12) target bundleno = 585 (0x249), region = 40  ;;  %s1314_s6 = sshll.u32 (!%p201_p12), %s206_s30, 3 }
  0x29   : > { %s207_s7 = scalar_lea.sflag (!%p201_p12), [#allocation3], %s206_s30  ;;  %s210_s9 = scalar_lea.vmem (!%p201_p12), [#allocation2], %s1314_s6 }
  0x2f   : > { %1695 = dma.done.wait (%p1784_p7), %s207_s7, 128  }
  0x30   : > { %1697 = vsyncadd (%p1784_p7), %s207_s7, 4294967168  ;;  %v1715_v0 = vmov 0.0|0.0   ;;  %vm1716_vm0 = vmmov 0   ;;  %v1717_v1 = vmov 0.0   ;;  %vm252_vm1 = vcmask 261120   ;;  %v241_v2 = vld [vmem:[%s1941_s1] sm:$0xff] }
  0x31   : > { %1512 = vmatprep.subr.bf16.mxu0 %v1715_v0  ;;  %1388 = vmatprep.mubr.msk.f32.mxu0 %vm1716_vm0, %v1717_v1  ;;  %v242_v3 = vld [vmem:[%s1941_s1 + $0x8] sm:$0xff]  ;;  %v243_v4 = vld [vmem:[%s1941_s1 + $0x10] sm:$0xff]  ;;  %v257_v5 = vand.u32 4294901760, %v241_v2  ;;  %v244_v7 = vld [vmem:[%s1941_s1 + $0x18] sm:$0xff]  ;;  %p236_p7 = scmp.lt.s32.totalorder %s1767_s22, 1  ;;  %vm1241_vm2 = vcmask 64512  }
  0x32   : > { %1548 = vmatprep.subr.bf16.mxu1 %v1715_v0  ;;  %1454 = vmatprep.mubr.msk.f32.mxu1 %vm1716_vm0, %v1717_v1  ;;  %v260_v6 = vand.u32 4294901760, %v242_v3  ;;  %v263_v8 = vand.u32 4294901760, %v243_v4  ;;  %v240_v9 = vld [vmem:[%s210_s9] sm:$0xff]  ;;  %v266_v10 = vand.u32 4294901760, %v244_v7  ;;  %v744_v48 = vld [vmem:[%s1943_s3 + $0x10] sm:$0xff]  ;;  %v745_v49 = vld [vmem:[%s1943_s3 + $0x18] sm:$0xff] }
  0x33   : > { %v254_v11 = vsel %vm252_vm1, %v240_v9, 0  ;;  %v337_v13 = vsub.f32 %v241_v2, %v257_v5  ;;  %v742_v41 = vld [vmem:[%s1943_s3] sm:$0xff]  ;;  %v743_v42 = vld [vmem:[%s1943_s3 + $0x8] sm:$0xff]  ;;  %v763_v50 = vand.u32 4294901760, %v744_v48  ;;  %v766_v51 = vand.u32 4294901760, %v745_v49  ;;  %s1955_s22 = smov (!%p236_p7, %s1767_s22), 1 }
  0x34   : > { %v1513_v12 = vpack.c.bf16 %v260_v6, %v257_v5  ;;  %v344_v14 = vsub.f32 %v242_v3, %v260_v6  ;;  %v351_v15 = vsub.f32 %v243_v4, %v263_v8  ;;  %v358_v16 = vsub.f32 %v244_v7, %v266_v10  ;;  %s1315_s7 = sshll.u32 %s1955_s22, 3 }
  0x35   : > { %v325_v17 = vand.u32 4294901760, %v254_v11  ;;  %v1516_v18 = vpack.c.bf16 %v266_v10, %v263_v8  ;;  %v338_v19 = vand.u32 4294901760, %v337_v13  ;;  %v757_v43 = vand.u32 4294901760, %v742_v41  ;;  %s239_s10 = scalar_lea.vmem %s1945_s5, %s1315_s7 }
  0x36   : > { %1514 = vmatpush3.bf16.msra.mxu0 %v1513_v12  ;;  %v345_v20 = vand.u32 4294901760, %v344_v14  ;;  %v352_v21 = vand.u32 4294901760, %v351_v15  ;;  %v359_v23 = vand.u32 4294901760, %v358_v16  ;;  %v1525_v37 = vpack.c.bf16 %v344_v14, %v337_v13 }
  0x37   : > { %1515 = vmatprep.subr.bf16.mxu0 %v1715_v0  ;;  %v326_v22 = vsub.f32 %v254_v11, %v325_v17  ;;  %v339_v24 = vsub.f32 %v337_v13, %v338_v19  ;;  %v1528_v38 = vpack.c.bf16 %v358_v16, %v351_v15  ;;  %v760_v44 = vand.u32 4294901760, %v743_v42  ;;  %v1316_v11 = vld [vmem:[%s1942_s2] ss:$0 sm:$0xff] }
  0x38   : > { %v346_v25 = vsub.f32 %v344_v14, %v345_v20  ;;  %v353_v26 = vsub.f32 %v351_v15, %v352_v21  ;;  %v360_v28 = vsub.f32 %v358_v16, %v359_v23  ;;  %v1537_v39 = vpack.c.bf16 %v345_v20, %v338_v19 }
  0x39   : > { %v327_v27 = vand.u32 4294901760, %v326_v22  ;;  %v340_v29 = vand.u32 4294901760, %v339_v24  ;;  %v1540_v40 = vpack.c.bf16 %v359_v23, %v352_v21  ;;  %v1883_v45 = vpack.c.bf16 %v760_v44, %v757_v43 }
  0x3a   : > { %1517 = vmatpush3.bf16.msra.mxu0 %v1516_v18  ;;  %v347_v30 = vand.u32 4294901760, %v346_v25  ;;  %v354_v33 = vand.u32 4294901760, %v353_v26  ;;  %v361_v34 = vand.u32 4294901760, %v360_v28  ;;  %v837_v46 = vsub.f32 %v742_v41, %v757_v43 }
  0x3b   : > { %v328_v31 = vsub.f32 %v326_v22, %v327_v27  ;;  %1518 = vmatprep.subr.bf16.mxu0 %v1715_v0  ;;  %v844_v47 = vsub.f32 %v743_v42, %v760_v44  ;;  %1550 = vmatpush3.bf16.msra.mxu1 %v1883_v45  ;;  %v1552_v54 = vpack.c.bf16 %v766_v51, %v763_v50 }
  0x3c   : > { %v1519_v32 = vpack.c.bf16 %v347_v30, %v340_v29  ;;  %v1522_v36 = vpack.c.bf16 %v361_v34, %v354_v33  ;;  %v838_v52 = vand.u32 4294901760, %v837_v46  ;;  %1551 = vmatprep.subr.bf16.mxu1 %v1715_v0  ;;  %v851_v55 = vsub.f32 %v744_v48, %v763_v50 }
  0x3d   : > { %v329_v35 = vand.u32 4294901760, %v328_v31  ;;  %v845_v53 = vand.u32 4294901760, %v844_v47  ;;  %v858_v56 = vsub.f32 %v745_v49, %v766_v51  ;;  %v1561_v7 = vpack.c.bf16 %v844_v47, %v837_v46 }
  0x3e   : > { %v839_v57 = vsub.f32 %v837_v46, %v838_v52  ;;  %v852_v60 = vand.u32 4294901760, %v851_v55 }
  0x3f   : > { %1389 = vmatmul.mubr.f32.vlgmr.msra.gmra.mrb[0].mxu0 %v329_v35  ;;  %v846_v58 = vsub.f32 %v844_v47, %v845_v53  ;;  %1553 = vmatpush3.bf16.msra.mxu1 %v1552_v54  ;;  %v859_v61 = vand.u32 4294901760, %v858_v56  ;;  %v1564_v8 = vpack.c.bf16 %v858_v56, %v851_v55  ;;  %v1573_v9 = vpack.c.bf16 %v845_v53, %v838_v52 }
  0x40   : > { %1520 = vmatpush3.bf16.msra.mxu0 %v1519_v32  ;;  %1399 = vmatprep.mubr.msk.f32.mxu0 %vm1716_vm0, %v1717_v1  ;;  %v840_v59 = vand.u32 4294901760, %v839_v57  ;;  %v853_v63 = vsub.f32 %v851_v55, %v852_v60 }
  0x41   : > { %1521 = vmatprep.subr.bf16.mxu0 %v1715_v0  ;;  %1554 = vmatprep.subr.bf16.mxu1 %v1715_v0  ;;  %v847_v62 = vand.u32 4294901760, %v846_v58  ;;  %v860_v2 = vsub.f32 %v858_v56, %v859_v61  ;;  %v1576_v10 = vpack.c.bf16 %v859_v61, %v852_v60 }
  0x42   : > { %v854_v4 = vand.u32 4294901760, %v853_v63 }
  0x43   : > { %v1555_v3 = vpack.c.bf16 %v847_v62, %v840_v59  ;;  %v861_v5 = vand.u32 4294901760, %v860_v2 }
  0x44   : > { %1523 = vmatpush3.bf16.msra.mxu0 %v1522_v36 }
  0x45   : > { %1524 = vmatprep.subr.bf16.mxu0 %v1715_v0  ;;  %v1558_v6 = vpack.c.bf16 %v861_v5, %v854_v4 }
  0x47   : > { %1400 = vmatmul.mubr.f32.vlgmr.msra.gmra.mrb[0].mxu0 %v325_v17 }
  0x48   : > { %1526 = vmatpush3.bf16.msra.mxu0 %v1525_v37  ;;  %1410 = vmatprep.mubr.msk.f32.mxu0 %vm1716_vm0, %v1717_v1 }
  0x49   : > { %1527 = vmatprep.subr.bf16.mxu0 %v1715_v0 }
  0x4c   : > { %1529 = vmatpush3.bf16.msra.mxu0 %v1528_v38 }
  0x4d   : > { %1530 = vmatprep.subr.bf16.mxu0 %v1715_v0 }
  0x4f   : > { %1411 = vmatmul.mubr.f32.vlgmr.msra.gmra.mrb[0].mxu0 %v326_v22  ;;  %v1317_v22 = vld [vmem:[%s1944_s4] ss:$0 sm:$0xff] }
  0x50   : > { %1532 = vmatpush3.bf16.msra.mxu0 %v1513_v12  ;;  %1421 = vmatprep.mubr.msk.f32.mxu0 %vm1716_vm0, %v1717_v1 }
  0x51   : > { %1533 = vmatprep.subr.bf16.mxu0 %v1715_v0 }
  0x54   : > { %1535 = vmatpush3.bf16.msra.mxu0 %v1516_v18 }
  0x55   : > { %1536 = vmatprep.subr.bf16.mxu0 %v1715_v0 }
  0x57   : > { %1422 = vmatmul.mubr.f32.vlgmr.msra.gmra.mrb[0].mxu0 %v327_v27 }
  0x58   : > { %1538 = vmatpush3.bf16.msra.mxu0 %v1537_v39  ;;  %1432 = vmatprep.mubr.msk.f32.mxu0 %vm1716_vm0, %v1717_v1 }
  0x59   : > { %1539 = vmatprep.subr.bf16.mxu0 %v1715_v0 }
  0x5c   : > { %1541 = vmatpush3.bf16.msra.mxu0 %v1540_v40 }
  0x5d   : > { %1542 = vmatprep.subr.bf16.mxu0 %v1715_v0 }
  0x5f   : > { %1433 = vmatmul.mubr.f32.vlgmr.msra.gmra.mrb[0].mxu0 %v325_v17 }
  0x60   : > { %1544 = vmatpush3.bf16.msra.mxu0 %v1513_v12  ;;  %1443 = vmatprep.mubr.msk.f32.mxu0 %vm1716_vm0, %v1717_v1 }
  0x61   : > { %1545 = vmatprep.subr.bf16.mxu0 %v1715_v0 }
  0x64   : > { %1547 = vmatpush3.bf16.msra.mxu0 %v1516_v18 }
  0x67   : > { %1444 = vmatmul.mubr.f32.vlgmr.msra.gmra.mrb[0].mxu0 %v325_v17 }
 0x13a   : > { %v737_v12 = vpop.f32.mrb[0].mxu0 }
 0x13b   : > { %v1584_v13 = vadd.f32 %v1316_v11, %v737_v12  ;;  %v1445_v14 = vpop.f32.mrb[1].mxu0 }
 0x13d   : > { %v741_v15 = vmax.f32 %v1584_v13, 0.0 }
 0x13f   : > { %v754_v16 = vsel %vm252_vm1, %v741_v15, 0 }
 0x140   : > { %v825_v17 = vand.u32 4294901760, %v754_v16 }
 0x142   : > { %v826_v18 = vsub.f32 %v754_v16, %v825_v17 }
 0x144   : > { %v827_v19 = vand.u32 4294901760, %v826_v18 }
 0x146   : > { %v828_v20 = vsub.f32 %v826_v18, %v827_v19 }
 0x148   : > { %v829_v21 = vand.u32 4294901760, %v828_v20 }
 0x14a   : > { %1455 = vmatmul.mubr.f32.vlgmr.msra.gmra.mrb[0].mxu1 %v829_v21 }
 0x14b   : > { %1556 = vmatpush3.bf16.msra.mxu1 %v1555_v3  ;;  %1465 = vmatprep.mubr.msk.f32.mxu1 %vm1716_vm0, %v1717_v1 }
 0x14c   : > { %1557 = vmatprep.subr.bf16.mxu1 %v1715_v0 }
 0x14f   : > { %1559 = vmatpush3.bf16.msra.mxu1 %v1558_v6 }
 0x150   : > { %1560 = vmatprep.subr.bf16.mxu1 %v1715_v0 }
 0x152   : > { %1466 = vmatmul.mubr.f32.vlgmr.msra.gmra.mrb[0].mxu1 %v825_v17 }
 0x153   : > { %1562 = vmatpush3.bf16.msra.mxu1 %v1561_v7  ;;  %1476 = vmatprep.mubr.msk.f32.mxu1 %vm1716_vm0, %v1717_v1 }
 0x154   : > { %1563 = vmatprep.subr.bf16.mxu1 %v1715_v0 }
 0x157   : > { %1565 = vmatpush3.bf16.msra.mxu1 %v1564_v8 }
 0x158   : > { %1566 = vmatprep.subr.bf16.mxu1 %v1715_v0 }
 0x15a   : > { %1477 = vmatmul.mubr.f32.vlgmr.msra.gmra.mrb[0].mxu1 %v826_v18 }
 0x15b   : > { %1568 = vmatpush3.bf16.msra.mxu1 %v1883_v45  ;;  %1487 = vmatprep.mubr.msk.f32.mxu1 %vm1716_vm0, %v1717_v1 }
 0x15c   : > { %1569 = vmatprep.subr.bf16.mxu1 %v1715_v0 }
 0x15f   : > { %1571 = vmatpush3.bf16.msra.mxu1 %v1552_v54 }
 0x160   : > { %1572 = vmatprep.subr.bf16.mxu1 %v1715_v0 }
 0x162   : > { %1488 = vmatmul.mubr.f32.vlgmr.msra.gmra.mrb[0].mxu1 %v827_v19 }
 0x163   : > { %1574 = vmatpush3.bf16.msra.mxu1 %v1573_v9  ;;  %1498 = vmatprep.mubr.msk.f32.mxu1 %vm1716_vm0, %v1717_v1 }
 0x164   : > { %1575 = vmatprep.subr.bf16.mxu1 %v1715_v0 }
 0x167   : > { %1577 = vmatpush3.bf16.msra.mxu1 %v1576_v10 }
 0x168   : > { %1578 = vmatprep.subr.bf16.mxu1 %v1715_v0 }
 0x16a   : > { %1499 = vmatmul.mubr.f32.vlgmr.msra.gmra.mrb[0].mxu1 %v825_v17 }
 0x16b   : > { %1580 = vmatpush3.bf16.msra.mxu1 %v1883_v45  ;;  %1509 = vmatprep.mubr.msk.f32.mxu1 %vm1716_vm0, %v1717_v1 }
 0x16c   : > { %1581 = vmatprep.subr.bf16.mxu1 %v1715_v0 }
 0x16f   : > { %1583 = vmatpush3.bf16.msra.mxu1 %v1552_v54 }
 0x172   : > { %1510 = vmatmul.mubr.f32.vlgmr.msra.gmra.mrb[0].mxu1 %v825_v17 }
 0x245   : > { %v1237_v23 = vpop.f32.mrb[0].mxu1 }
 0x246   : > { %v1585_v24 = vadd.f32 %v1317_v22, %v1237_v23  ;;  %v1511_v25 = vpop.f32.mrb[1].mxu1 }
 0x248   : > { %1242 = vst.msk [vmem:[%s239_s10] sm:$0xff] %vm1241_vm2, %v1585_v24 }
 0x249 PF: > { %p15_p8 = scmp.ge.s32.totalorder %s1770_s23, 4   ;;  %s1950_s18 = smov %s1704_s19 }
 0x24a   : > { %s1951_s19 = smov %s1708_s20  ;;  %s1952_s20 = smov %s1780_s26 }
 0x24b   : > { %s1953_s21 = smov %s1770_s23  ;;  %17 = sbr.rel (!%p15_p8) target bundleno = 3 (0x3), region = 80 }
 0x252   :  { %1262 = vsyncpa [#allocation3], 1 }
 0x253   :  { %1264 = vsyncpa [#allocation3 + $0x1], 1 }

</bundles_post_ra>
